<compile_context>
chip_gen: v5e
topology: v5e:2x2
jax: 0.10.0
libtpu: 0.0.40
codegen_flags: <defaults>
</compile_context>

<pallas_src>
import functools

import jax
import jax.numpy as jnp
from jax import lax
from jax.experimental import pallas as pl
from jax.experimental.pallas import tpu as pltpu


# ---------------------------------------------------------------------------
# Small helpers.
# ---------------------------------------------------------------------------
def _cdiv(a, b):
    return -(-a // b)


def _round_up(a, m):
    return _cdiv(a, m) * m


def _vmem_capacity_bytes():
    """Physical per-core VMEM; conservative default if the query fails."""
    try:
        info = pltpu.get_tpu_info()
        cap = getattr(info, "vmem_capacity_bytes", None)
        if cap:
            return int(cap)
    except Exception:
        pass
    return 64 << 20  # v7x per-TC size == safest assumption


def _vmem_plan():
    """Generation-aware (vmem_limit_bytes, tile_budget_bytes)."""
    cap = _vmem_capacity_bytes()
    if cap <= (64 << 20):            # v7x-class: 64 MiB per TensorCore
        return 36 << 20, 18 << 20
    return 96 << 20, 56 << 20        # v5e / v6e: 128 MiB, single TC


def _choose_k_tiling(k, cap=128):
    """Return (tk, k_pad): tk is a multiple of 8 (<= cap), tk divides k_pad,
    k_pad >= k with (near-)minimal padding.  Never returns a whole-K block."""
    if k <= cap:
        tk = _round_up(k, 8)
        return tk, tk
    best_tk, best_pad = None, None
    for tk in range(cap, 7, -8):          # 128, 120, ..., 8
        pad = _round_up(k, tk) - k
        if best_pad is None or pad < best_pad:
            best_tk, best_pad = tk, pad
        if pad == 0:
            break
    return best_tk, k + best_pad


def _choose_row_tile(bs, tk, cin_pad, layer_dims, tile_budget,
                     t_cap=2048, min_tiles=2):
    """VMEM-budgeted row tile T (multiple of 8).  Capped so the 'parallel' row
    axis has >= min_tiles blocks whenever BS allows (keeps both v7x
    TensorCores busy; costs ~one extra grid step on single-TC v5e/v6e)."""
    lane = 128
    widths = [co for _, co in layer_dims]
    c_max = max(widths)
    # Weights (bf16) + biases (f32); assume double-buffered for the budget
    # even though Buffered(1) is requested when supported.
    fixed = 2 * sum(cp * co * 2 + max(co, lane) * 4 for cp, co in layer_dims)
    fixed += 2 << 20                      # Mosaic internal scratch margin
    per_row = (
        2 * tk * max(cin_pad, lane) * 2   # bf16 input block (lane-padded in VMEM), x2 buffers
        + tk * c_max * 4                  # live f32 accumulator
        + 2 * tk * c_max * 2              # live bf16 h + a layer-to-layer temp
        + 2 * max(widths[-1], lane) * 4   # resident f32 output block, x2 buffers
    )
    t = (tile_budget - fixed) // per_row
    t = max(8, min(int(t), t_cap))
    t = min(t, max(8, _round_up(_cdiv(bs, min_tiles), 8)))
    return max(8, (t // 8) * 8)


# ---------------------------------------------------------------------------
# Runtime probe: is single-buffering (pl.Buffered(1)) supported?
# ---------------------------------------------------------------------------
_BUFFERED_ONE_OK = None


def _buffered_one_supported():
    global _BUFFERED_ONE_OK
    if _BUFFERED_ONE_OK is not None:
        return _BUFFERED_ONE_OK
    try:
        def _probe_kernel(x_ref, o_ref):
            o_ref[...] = x_ref[...] + 1.0

        f = pl.pallas_call(
            _probe_kernel,
            out_shape=jax.ShapeDtypeStruct((8, 128), jnp.float32),
            grid=(2,),
            in_specs=[pl.BlockSpec((8, 128), lambda i: (0, 0),
                                   pipeline_mode=pl.Buffered(1))],
            out_specs=pl.BlockSpec((8, 128), lambda i: (0, 0)),
        )
        jax.block_until_ready(f(jnp.zeros((8, 128), jnp.float32)))
        _BUFFERED_ONE_OK = True
    except Exception:
        _BUFFERED_ONE_OK = False
    return _BUFFERED_ONE_OK


def _const_spec(shape):
    """BlockSpec for an operand that is identical at every grid step."""
    ndim = len(shape)
    index_map = lambda i, k, _n=ndim: (0,) * _n
    if _buffered_one_supported():
        return pl.BlockSpec(shape, index_map, pipeline_mode=pl.Buffered(1))
    return pl.BlockSpec(shape, index_map)


# ---------------------------------------------------------------------------
# Sampling / grouping glue (plain JAX) -- mirrors the PyTorch helpers.
# ---------------------------------------------------------------------------
def farthest_point_sample(xyz, npoint, key):
    """xyz: [B, N, 3] -> centroids: [B, npoint] (int32)."""
    B, N, _ = xyz.shape
    # PyTorch seeds FPS with torch.randint; we draw the first centroid from a
    # PRNGKey instead (same algorithm, different random seed source).
    farthest = jax.random.randint(key, (B,), 0, N, dtype=jnp.int32)
    distance = jnp.full((B, N), 1e10, dtype=jnp.float32)
    centroids = jnp.zeros((B, npoint), dtype=jnp.int32)
    batch = jnp.arange(B)

    def body(i, carry):
        centroids, distance, farthest = carry
        centroids = centroids.at[:, i].set(farthest)
        centroid = xyz[batch, farthest][:, None, :]          # [B, 1, 3]
        dist = jnp.sum((xyz - centroid) ** 2, axis=-1)
        distance = jnp.minimum(distance, dist)
        farthest = jnp.argmax(distance, axis=-1).astype(jnp.int32)
        return centroids, distance, farthest

    centroids, _, _ = lax.fori_loop(0, npoint, body, (centroids, distance, farthest))
    return centroids


def index_points(points, idx):
    """points: [B,N,C], idx: [B,S] -> [B,S,C]."""
    B = points.shape[0]
    return points[jnp.arange(B)[:, None], idx]


def index_points_group(points, idx):
    """points: [B,N,C], idx: [B,S,K] -> [B,S,K,C]."""
    B = points.shape[0]
    return points[jnp.arange(B)[:, None, None], idx]


def square_distance(src, dst):
    dist = -2.0 * jnp.matmul(src, jnp.swapaxes(dst, 1, 2))
    dist = dist + jnp.sum(src ** 2, axis=-1)[:, :, None]
    dist = dist + jnp.sum(dst ** 2, axis=-1)[:, None, :]
    return dist


def query_ball_point(radius, nsample, xyz, new_xyz):
    # NOTE: like the original PyTorch code, if no neighbor falls inside the
    # radius the sentinel index N can survive; JAX gathers clamp it silently.
    B, N, _ = xyz.shape
    S = new_xyz.shape[1]
    sqrdists = square_distance(new_xyz, xyz)                  # [B,S,N]
    group_idx = jnp.broadcast_to(jnp.arange(N, dtype=jnp.int32)[None, None, :],
                                 (B, S, N))
    group_idx = jnp.where(sqrdists > radius ** 2, N, group_idx)
    group_idx = jnp.sort(group_idx, axis=-1)[:, :, :nsample]
    group_first = group_idx[:, :, 0:1]
    group_idx = jnp.where(group_idx == N,
                          jnp.broadcast_to(group_first, group_idx.shape),
                          group_idx)
    return group_idx


# ---------------------------------------------------------------------------
# Pallas kernel: shared-MLP (1x1 conv + folded BN + ReLU) stack + max over K.
# ---------------------------------------------------------------------------
def _make_mlp_max_kernel(n_layers, cin_pad, k_valid, k_pad):
    mask_k = (k_pad != k_valid)

    def kernel(*refs):
        x_ref = refs[0]
        w_refs = refs[1:1 + n_layers]
        b_refs = refs[1 + n_layers:1 + 2 * n_layers]
        o_ref = refs[1 + 2 * n_layers]

        kidx = pl.program_id(1)
        t, tk, _ = x_ref.shape

        # bf16 operands feed the MXU; accumulation and all elementwise work
        # (bias, ReLU, max) stay in f32 -- keeps v5e's non-bf16 VPU happy while
        # halving HBM/VMEM traffic for inputs/weights.
        h = x_ref[...].reshape(t * tk, cin_pad)               # bf16
        acc = None
        for l in range(n_layers):
            acc = jnp.dot(h, w_refs[l][...], preferred_element_type=jnp.float32)
            acc = jnp.maximum(acc + b_refs[l][...], 0.0)       # f32 affine + ReLU
            if l + 1 < n_layers:
                h = acc.astype(jnp.bfloat16)

        c_last = acc.shape[-1]
        acc3 = acc.reshape(t, tk, c_last)
        if mask_k:
            # Padded nsample rows would otherwise contribute ReLU(bias) to the
            # max; mask them to -inf (each K tile holds >= 1 valid sample).
            samp = kidx * tk + lax.broadcasted_iota(jnp.int32, (tk, c_last), 0)
            acc3 = jnp.where((samp < k_valid)[None, :, :], acc3, -jnp.inf)

        # torch.max(new_points, 2)[0]  <=>  max over the nsample axis.
        tile_max = jnp.max(acc3, axis=1)                       # f32 (t, c_last)

        @pl.when(kidx == 0)
        def _():
            o_ref[...] = tile_max

        @pl.when(kidx > 0)
        def _():
            o_ref[...] = jnp.maximum(o_ref[...], tile_max)

    return kernel


def mlp_max_pallas(x, weights, biases):
    """x: [BS, K, Cin] (channel-last grouped features).
    weights[l]: (Cin_l, Cout_l) with BN folded in; biases[l]: (Cout_l,).
    Returns [BS, Cout_last] f32."""
    BS, K, Cin = x.shape
    n_layers = len(weights)
    couts = [int(w.shape[1]) for w in weights]

    # Per-layer padding: contraction dim of layer 0 -> multiple of 8 (cheap on
    # HBM traffic), every layer output -> its OWN multiple of 128 (lane-dense
    # matmuls + dense output store).  No uniform Cmax cube.
    cin_pad = _round_up(max(Cin, 8), 8)
    layer_dims = []
    prev = cin_pad
    for co in couts:
        co_pad = _round_up(co, 128)
        layer_dims.append((prev, co_pad))
        prev = co_pad
    c_out_pad = layer_dims[-1][1]

    tk, k_pad = _choose_k_tiling(K)
    vmem_limit, tile_budget = _vmem_plan()
    t = _choose_row_tile(BS, tk, cin_pad, layer_dims, tile_budget)
    bs_pad = _round_up(BS, t)

    # Cast + pad in one fused step (no separate f32 HBM round trip).  Padded
    # rows are sliced off afterwards, padded channels hit zero weight rows,
    # padded samples are masked inside the kernel.
    x_p = jnp.pad(x.astype(jnp.bfloat16),
                  ((0, bs_pad - BS), (0, k_pad - K), (0, cin_pad - Cin)))

    w_ps, b_ps = [], []
    for (cp, co_p), w, b, co in zip(layer_dims, weights, biases, couts):
        wp = jnp.zeros((cp, co_p), jnp.float32).at[:w.shape[0], :co].set(w)
        w_ps.append(wp.astype(jnp.bfloat16))
        b_ps.append(jnp.zeros((1, co_p), jnp.float32).at[0, :co].set(b.reshape(-1)))

    grid = (bs_pad // t, k_pad // tk)

    in_specs = [pl.BlockSpec((t, tk, cin_pad), lambda i, k: (i, k, 0))]
    in_specs += [_const_spec((cp, co_p)) for cp, co_p in layer_dims]
    in_specs += [_const_spec((1, co_p)) for _, co_p in layer_dims]
    out_specs = pl.BlockSpec((t, c_out_pad), lambda i, k: (i, 0))

    flops = 2 * bs_pad * k_pad * sum(cp * co for cp, co in layer_dims)
    bytes_accessed = (x_p.size * 2
                      + sum(cp * co * 2 + co * 4 for cp, co in layer_dims)
                      + bs_pad * c_out_pad * 4)

    out = pl.pallas_call(
        _make_mlp_max_kernel(n_layers, cin_pad, K, k_pad),
        out_shape=jax.ShapeDtypeStruct((bs_pad, c_out_pad), jnp.float32),
        grid=grid,
        in_specs=in_specs,
        out_specs=out_specs,
        compiler_params=pltpu.CompilerParams(
            dimension_semantics=("parallel", "arbitrary"),
            vmem_limit_bytes=vmem_limit,
        ),
        cost_estimate=pl.CostEstimate(
            flops=flops, transcendentals=0, bytes_accessed=bytes_accessed),
    )(x_p, *w_ps, *b_ps)

    return out[:BS, :couts[-1]]


def _mlp_max_reference(x, weights, biases):
    """Pure-JAX reference matching the kernel numerics (bf16 MXU operands,
    f32 accumulation / elementwise)."""
    h = x.astype(jnp.bfloat16)
    acc = None
    for w, b in zip(weights, biases):
        acc = jnp.einsum("skc,co->sko", h, w.astype(jnp.bfloat16),
                         preferred_element_type=jnp.float32)
        acc = jnp.maximum(acc + b.reshape(1, 1, -1), 0.0)
        h = acc.astype(jnp.bfloat16)
    return jnp.max(acc, axis=1)


# ---------------------------------------------------------------------------
# Parameters (deterministic, in-script) and BN folding.
# ---------------------------------------------------------------------------
def init_params(key, in_channel, mlp):
    params = []
    last = in_channel
    for out in mlp:
        k1, k2, k3, k4, key = jax.random.split(key, 5)
        params.append(dict(
            w=0.1 * jax.random.normal(k1, (last, out), jnp.float32),  # Conv2d 1x1 (Cin, Cout)
            b=0.1 * jax.random.normal(k2, (out,), jnp.float32),
            gamma=1.0 + 0.1 * jax.random.normal(k3, (out,), jnp.float32),
            beta=0.1 * jax.random.normal(k4, (out,), jnp.float32),
            mean=jnp.zeros((out,), jnp.float32),
            var=jnp.ones((out,), jnp.float32),
        ))
        last = out
    return params


def fold_bn(params, eps=1e-5):
    # TODO(synk): BatchNorm2d is applied in eval mode (folded per-channel
    # affine); training-mode batch statistics are not computed.
    ws, bs = [], []
    for p in params:
        scale = p["gamma"] / jnp.sqrt(p["var"] + eps)
        ws.append(p["w"] * scale[None, :])
        bs.append((p["b"] - p["mean"]) * scale + p["beta"])
    return ws, bs


# ---------------------------------------------------------------------------
# Full PointNetSetAbstraction forward (jitted; sampling stays in plain JAX).
# ---------------------------------------------------------------------------
@functools.partial(jax.jit,
                   static_argnames=("npoint", "nsample", "group_all", "use_pallas"))
def pointnet_set_abstraction(xyz, points, params, fps_key, *, npoint, radius,
                             nsample, group_all, use_pallas=True):
    """xyz: [B, 3, N], points: [B, D, N] (PyTorch channel-first convention).
    Returns (new_xyz [B, 3, S], new_points [B, C_out, S])."""
    B = xyz.shape[0]
    xyz_t = jnp.transpose(xyz, (0, 2, 1))                     # [B, N, 3]
    points_t = jnp.transpose(points, (0, 2, 1)) if points is not None else None

    if group_all:
        new_xyz = jnp.zeros((B, 1, 3), xyz_t.dtype)
        grouped_xyz = xyz_t[:, None, :, :]                    # [B, 1, N, 3]
        if points_t is not None:
            new_points = jnp.concatenate([grouped_xyz, points_t[:, None, :, :]], axis=-1)
        else:
            new_points = grouped_xyz
    else:
        fps_idx = farthest_point_sample(xyz_t, npoint, fps_key)      # [B, S]
        new_xyz = index_points(xyz_t, fps_idx)                       # [B, S, 3]
        idx = query_ball_point(radius, nsample, xyz_t, new_xyz)      # [B, S, K]
        grouped_xyz = index_points_group(xyz_t, idx)                 # [B, S, K, 3]
        grouped_xyz_norm = grouped_xyz - new_xyz[:, :, None, :]
        if points_t is not None:
            grouped_points = index_points_group(points_t, idx)       # [B, S, K, D]
            new_points = jnp.concatenate([grouped_xyz_norm, grouped_points], axis=-1)
        else:
            new_points = grouped_xyz_norm

    B_, S, K, Cin = new_points.shape
    ws, bs_list = fold_bn(params)
    x = new_points.reshape(B_ * S, K, Cin)

    if use_pallas:
        feat = mlp_max_pallas(x, ws, bs_list)                 # [B*S, Cout]
    else:
        feat = _mlp_max_reference(x, ws, bs_list)

    new_points_out = jnp.transpose(feat.reshape(B_, S, -1), (0, 2, 1))   # [B, Cout, S]
    new_xyz_out = jnp.transpose(new_xyz, (0, 2, 1))                      # [B, 3, S]
    return new_xyz_out, new_points_out


if __name__ == "__main__":
    key = jax.random.PRNGKey(0)
    k_xyz, k_pts, k_param, k_fps = jax.random.split(key, 4)

    B, N, D = 2, 32, 4
    npoint, radius, nsample = 8, 0.5, 16
    mlp = [16, 32]
    in_channel = 3 + D    # grouped xyz (3) + point features (D)

    xyz = jax.random.normal(k_xyz, (B, 3, N), jnp.float32)
    points = jax.random.normal(k_pts, (B, D, N), jnp.float32)
    params = init_params(k_param, in_channel, mlp)

    _buffered_one_supported()   # warm the single-buffering probe outside jit

    # --- standard sample_and_group path ---
    new_xyz, new_feat = pointnet_set_abstraction(
        xyz, points, params, k_fps, npoint=npoint, radius=radius,
        nsample=nsample, group_all=False, use_pallas=True)
    jax.block_until_ready((new_xyz, new_feat))
    assert new_xyz.shape == (B, 3, npoint)
    assert new_feat.shape == (B, mlp[-1], npoint)

    ref_xyz, ref_feat = pointnet_set_abstraction(
        xyz, points, params, k_fps, npoint=npoint, radius=radius,
        nsample=nsample, group_all=False, use_pallas=False)
    assert jnp.allclose(new_xyz, ref_xyz, atol=1e-5, rtol=1e-5)
    assert jnp.allclose(new_feat, ref_feat, atol=1e-2, rtol=1e-2)

    # --- nsample not a multiple of 8 (exercises the in-kernel K-padding mask) ---
    m_xyz, m_feat = pointnet_set_abstraction(
        xyz, points, params, k_fps, npoint=npoint, radius=radius,
        nsample=12, group_all=False, use_pallas=True)
    r_xyz, r_feat = pointnet_set_abstraction(
        xyz, points, params, k_fps, npoint=npoint, radius=radius,
        nsample=12, group_all=False, use_pallas=False)
    jax.block_until_ready((m_xyz, m_feat))
    assert jnp.allclose(m_feat, r_feat, atol=1e-2, rtol=1e-2)

    # --- group_all path (running-max over the tiled nsample axis) ---
    ga_xyz, ga_feat = pointnet_set_abstraction(
        xyz, points, params, k_fps, npoint=1, radius=1.0, nsample=1,
        group_all=True, use_pallas=True)
    gr_xyz, gr_feat = pointnet_set_abstraction(
        xyz, points, params, k_fps, npoint=1, radius=1.0, nsample=1,
        group_all=True, use_pallas=False)
    jax.block_until_ready((ga_xyz, ga_feat))
    assert ga_xyz.shape == (B, 3, 1)
    assert ga_feat.shape == (B, mlp[-1], 1)
    assert jnp.allclose(ga_feat, gr_feat, atol=1e-2, rtol=1e-2)

    print("KERNEL_OK")
</pallas_src>

<mosaic_0001>
module attributes {stable_mosaic.version = 11 : i64} {
  func.func @_probe_kernel(%arg0: i32, %arg1: memref<8x128xf32, #tpu.memory_space<vmem>>, %arg2: memref<8x128xf32, #tpu.memory_space<vmem>>) attributes {dimension_semantics = [#tpu.dimension_semantics<arbitrary>], iteration_bounds = array<i64: 2>, scalar_prefetch = 0 : i64, scratch_operands = 0 : i64, tpu.core_type = #tpu.core_type<tc>, window_params = [{pipeline_mode = #tpu.pipeline_mode<synchronous>, transform_indices = @transform_0, window_bounds = array<i64: 8, 128>}, {pipeline_mode = #tpu.pipeline_mode<synchronous>, transform_indices = @transform_1, window_bounds = array<i64: 8, 128>}]} {
    %c0 = arith.constant 0 : index
    %c0_0 = arith.constant 0 : index
    %0 = vector.load %arg1[%c0, %c0_0] : memref<8x128xf32, #tpu.memory_space<vmem>>, vector<8x128xf32>
    %cst = arith.constant 1.000000e+00 : f32
    %1 = vector.broadcast %cst : f32 to vector<8x128xf32>
    %2 = arith.addf %0, %1 : vector<8x128xf32>
    %c0_1 = arith.constant 0 : index
    %c0_2 = arith.constant 0 : index
    %3 = vector.load %arg2[%c0_1, %c0_2] : memref<8x128xf32, #tpu.memory_space<vmem>>, vector<8x128xf32>
    tpu.vector_store %arg2[%c0_1, %c0_2], %2 {strides = array<i32>} : memref<8x128xf32, #tpu.memory_space<vmem>>, vector<8x128xf32>,
    return
  }
  func.func @transform_0(%arg0: i32) -> (i32, i32) {
    %c0_i32 = arith.constant 0 : i32
    %c0_i32_0 = arith.constant 0 : i32
    %c0_i32_1 = arith.constant 0 : i32
    return %c0_i32, %c0_i32_0 : i32, i32
  }
  func.func @transform_1(%arg0: i32) -> (i32, i32) {
    %c0_i32 = arith.constant 0 : i32
    %c0_i32_0 = arith.constant 0 : i32
    %c0_i32_1 = arith.constant 0 : i32
    return %c0_i32, %c0_i32_0 : i32, i32
  }
}

module attributes {stable_mosaic.version = 11 : i64} {
  func.func @kernel(%arg0: i32, %arg1: i32, %arg2: memref<8x16x8xbf16, #tpu.memory_space<vmem>>, %arg3: memref<8x128xbf16, #tpu.memory_space<vmem>>, %arg4: memref<128x128xbf16, #tpu.memory_space<vmem>>, %arg5: memref<1x128xf32, #tpu.memory_space<vmem>>, %arg6: memref<1x128xf32, #tpu.memory_space<vmem>>, %arg7: memref<8x128xf32, #tpu.memory_space<vmem>>) attributes {dimension_semantics = [#tpu.dimension_semantics<parallel>, #tpu.dimension_semantics<arbitrary>], iteration_bounds = array<i64: 2, 1>, scalar_prefetch = 0 : i64, scratch_operands = 0 : i64, tpu.core_type = #tpu.core_type<tc>, window_params = [{transform_indices = @transform_0, window_bounds = array<i64: 8, 16, 8>}, {pipeline_mode = #tpu.pipeline_mode<synchronous>, transform_indices = @transform_1, window_bounds = array<i64: 8, 128>}, {pipeline_mode = #tpu.pipeline_mode<synchronous>, transform_indices = @transform_2, window_bounds = array<i64: 128, 128>}, {pipeline_mode = #tpu.pipeline_mode<synchronous>, transform_indices = @transform_3, window_bounds = array<i64: 1, 128>}, {pipeline_mode = #tpu.pipeline_mode<synchronous>, transform_indices = @transform_4, window_bounds = array<i64: 1, 128>}, {transform_indices = @transform_5, window_bounds = array<i64: 8, 128>}]} {
    %c0 = arith.constant 0 : index
    %c0_0 = arith.constant 0 : index
    %c0_1 = arith.constant 0 : index
    %0 = vector.load %arg2[%c0, %c0_0, %c0_1] : memref<8x16x8xbf16, #tpu.memory_space<vmem>>, vector<8x16x8xbf16>
    %1 = vector.shape_cast %0 : vector<8x16x8xbf16> to vector<128x8xbf16>
    %c0_2 = arith.constant 0 : index
    %c0_3 = arith.constant 0 : index
    %2 = vector.load %arg3[%c0_2, %c0_3] : memref<8x128xbf16, #tpu.memory_space<vmem>>, vector<8x128xbf16>
    %cst = arith.constant dense<0.000000e+00> : vector<128x128xf32>
    %3 = tpu.matmul %1, %2, %cst {dimension_numbers = #tpu.dot_dimension_numbers<[1], [0], [0], [1], [0, 0, 1, 1], [], []>} : vector<128x8xbf16>, vector<8x128xbf16>, vector<128x128xf32> -> vector<128x128xf32>
    %c0_4 = arith.constant 0 : index
    %c0_5 = arith.constant 0 : index
    %4 = vector.load %arg5[%c0_4, %c0_5] : memref<1x128xf32, #tpu.memory_space<vmem>>, vector<1x128xf32>
    %5 = vector.broadcast %4 : vector<1x128xf32> to vector<128x128xf32>
    %6 = arith.addf %3, %5 : vector<128x128xf32>
    %cst_6 = arith.constant 0.000000e+00 : f32
    %7 = vector.broadcast %cst_6 : f32 to vector<128x128xf32>
    %8 = arith.maximumf %6, %7 : vector<128x128xf32>
    %9 = arith.truncf %8 : vector<128x128xf32> to vector<128x128xbf16>
    %c0_7 = arith.constant 0 : index
    %c0_8 = arith.constant 0 : index
    %10 = vector.load %arg4[%c0_7, %c0_8] : memref<128x128xbf16, #tpu.memory_space<vmem>>, vector<128x128xbf16>
    %cst_9 = arith.constant dense<0.000000e+00> : vector<128x128xf32>
    %11 = tpu.matmul %9, %10, %cst_9 {dimension_numbers = #tpu.dot_dimension_numbers<[1], [0], [0], [1], [0, 0, 1, 1], [], []>} : vector<128x128xbf16>, vector<128x128xbf16>, vector<128x128xf32> -> vector<128x128xf32>
    %c0_10 = arith.constant 0 : index
    %c0_11 = arith.constant 0 : index
    %12 = vector.load %arg6[%c0_10, %c0_11] : memref<1x128xf32, #tpu.memory_space<vmem>>, vector<1x128xf32>
    %13 = vector.broadcast %12 : vector<1x128xf32> to vector<128x128xf32>
    %14 = arith.addf %11, %13 : vector<128x128xf32>
    %cst_12 = arith.constant 0.000000e+00 : f32
    %15 = vector.broadcast %cst_12 : f32 to vector<128x128xf32>
    %16 = arith.maximumf %14, %15 : vector<128x128xf32>
    %17 = vector.shape_cast %16 : vector<128x128xf32> to vector<8x16x128xf32>
    %cst_13 = arith.constant dense<0xFF800000> : vector<8x128xf32>
    %18 = vector.multi_reduction <maximumf>, %17, %cst_13 [1] : vector<8x16x128xf32> to vector<8x128xf32>
    %c0_i32 = arith.constant 0 : i32
    %19 = arith.cmpi eq, %arg1, %c0_i32 : i32
    %20 = arith.extui %19 : i1 to i32
    %c0_i32_14 = arith.constant 0 : i32
    %21 = arith.cmpi ne, %20, %c0_i32_14 : i32
    scf.if %21 {
      %c0_17 = arith.constant 0 : index
      %c0_18 = arith.constant 0 : index
      %25 = vector.load %arg7[%c0_17, %c0_18] : memref<8x128xf32, #tpu.memory_space<vmem>>, vector<8x128xf32>
      tpu.vector_store %arg7[%c0_17, %c0_18], %18 {strides = array<i32>} : memref<8x128xf32, #tpu.memory_space<vmem>>, vector<8x128xf32>,
    } else {
    }
    %c0_i32_15 = arith.constant 0 : i32
    %22 = arith.cmpi sgt, %arg1, %c0_i32_15 : i32
    %23 = arith.extui %22 : i1 to i32
    %c0_i32_16 = arith.constant 0 : i32
    %24 = arith.cmpi ne, %23, %c0_i32_16 : i32
    scf.if %24 {
      %c0_17 = arith.constant 0 : index
      %c0_18 = arith.constant 0 : index
      %25 = vector.load %arg7[%c0_17, %c0_18] : memref<8x128xf32, #tpu.memory_space<vmem>>, vector<8x128xf32>
      %26 = arith.maximumf %25, %18 : vector<8x128xf32>
      %c0_19 = arith.constant 0 : index
      %c0_20 = arith.constant 0 : index
      %27 = vector.load %arg7[%c0_19, %c0_20] : memref<8x128xf32, #tpu.memory_space<vmem>>, vector<8x128xf32>
      tpu.vector_store %arg7[%c0_19, %c0_20], %26 {strides = array<i32>} : memref<8x128xf32, #tpu.memory_space<vmem>>, vector<8x128xf32>,
    } else {
    }
    return
  }
  func.func @transform_0(%arg0: i32, %arg1: i32) -> (i32, i32, i32) {
    %c0_i32 = arith.constant 0 : i32
    %c0_i32_0 = arith.constant 0 : i32
    return %arg0, %arg1, %c0_i32 : i32, i32, i32
  }
  func.func @transform_1(%arg0: i32, %arg1: i32) -> (i32, i32) {
    %c0_i32 = arith.constant 0 : i32
    %c0_i32_0 = arith.constant 0 : i32
    %c0_i32_1 = arith.constant 0 : i32
    return %c0_i32, %c0_i32_0 : i32, i32
  }
  func.func @transform_2(%arg0: i32, %arg1: i32) -> (i32, i32) {
    %c0_i32 = arith.constant 0 : i32
    %c0_i32_0 = arith.constant 0 : i32
    %c0_i32_1 = arith.constant 0 : i32
    return %c0_i32, %c0_i32_0 : i32, i32
  }
  func.func @transform_3(%arg0: i32, %arg1: i32) -> (i32, i32) {
    %c0_i32 = arith.constant 0 : i32
    %c0_i32_0 = arith.constant 0 : i32
    %c0_i32_1 = arith.constant 0 : i32
    return %c0_i32, %c0_i32_0 : i32, i32
  }
  func.func @transform_4(%arg0: i32, %arg1: i32) -> (i32, i32) {
    %c0_i32 = arith.constant 0 : i32
    %c0_i32_0 = arith.constant 0 : i32
    %c0_i32_1 = arith.constant 0 : i32
    return %c0_i32, %c0_i32_0 : i32, i32
  }
  func.func @transform_5(%arg0: i32, %arg1: i32) -> (i32, i32) {
    %c0_i32 = arith.constant 0 : i32
    %c0_i32_0 = arith.constant 0 : i32
    return %arg0, %c0_i32 : i32, i32
  }
}

</mosaic_0001>

<bundles_post_ra>
// kernel: tpu_custom_call.1
= control target key start
LH: loop header
LB: loop body
LE: loop exit
PB: predicated region body
PF: predicated region fallthrough
CT: control target
= control target key end

     0   :  { %6 = vsyncpa [#allocation3], 0  ;;  %s287_s0 = inlined_call_operand.hbm [shape: f32[8,128], index: 0, kind: input, shape index: {}]   ;;  %s288_s1 = inlined_call_operand.hbm [shape: f32[8,128], index: 1, kind: output, shape index: {}]  }
   0x1   :  { %7 = vsyncpa [#allocation4], 0  ;;  %s270_s6 = smov 0  }
   0x2 LB: > { %s149_s7 = sadd.s32 4294967295, %s256_s6   ;;  %p150_p0 = scmp.ge.s32.totalorder %s256_s6, 1  ;;  %s256_s6 = sphi %s270_s6, %s13_s6  }
   0x3   : > { %p60_p1 = scmp.lt.s32.totalorder %s256_s6, 3  ;;  %s72_s10 = sshll.u32 %s287_s0, 4  ;;  %s73_s10 = int_to_ptr.hbm [resolvable:$true] %s72_s10 }
   0x4   : > { %p170_p3 = scmp.eq.s32.totalorder %s149_s7, 0  ;;  %s258_s11 = smov [#allocation2]  }
   0x5   : > { %p61_p2 = pnand %p150_p0, %p60_p1  ;;  %s74_s12 = sshll.u32 %s258_s11, 4  ;;  %s75_s12 = int_to_ptr.vmem [resolvable:$true] %s74_s12 }
   0x7   : > { %p166_p4 = pneg %p61_p2  ;;  %87 = sbr.rel (%p61_p2) target bundleno = 20 (0x14), region = 24 }
   0x9   : > { %p167_p5 = pnand %p170_p3, %p166_p4 }
   0xb   : > { %169 = dma.hbm_to_vmem [thread:$0]  (!%p167_p5), %s73_s10, 128, %s75_s12, [#allocation3]  }
   0xc   : > { %247 = dma.done.wait (%p170_p3), [#allocation3], 128  }
   0xd   : > { %249 = vsyncadd (%p170_p3), [#allocation3], 4294967168  ;;  %s259_s13 = smov [#allocation5]   ;;  %s109_s17 = sshll.u32 %s288_s1, 4  ;;  %v98_v0 = vld [vmem:[#allocation2] sm:$0xff]  ;;  %s110_s17 = int_to_ptr.hbm [resolvable:$true] %s109_s17 }
   0xe   : > { %s107_s14 = sshll.u32 %s259_s13, 4  ;;  %p172_p6 = scmp.eq.s32.totalorder %s149_s7, 1  ;;  %v99_v1 = vadd.f32 1.0, %v98_v0  ;;  %s108_s14 = int_to_ptr.vmem [resolvable:$true] %s107_s14 }
  0x10   : > { %100 = vst [vmem:[#allocation5] sm:$0xff] %v99_v1 }
  0x11   : > { %163 = dma.vmem_to_hbm [thread:$0]  (%p172_p6), %s108_s14, 128, %s110_s17, [#allocation4]  }
  0x12   : > { %251 = dma.done.wait (%p172_p6), [#allocation4], 128  }
  0x13   : > { %253 = vsyncadd (%p172_p6), [#allocation4], 4294967168 }
  0x14 PF: > { %s13_s6 = sadd.s32 1, %s256_s6  }
  0x15   : > { %p10_p7 = scmp.ge.s32.totalorder %s13_s6, 4  }
  0x17   :  { %12 = sbr.rel (!%p10_p7) target bundleno = 2 (0x2), region = 53 }
  0x1c   :  { %123 = vsyncpa [#allocation3], 1 }
  0x1d   :  { %125 = vsyncpa [#allocation3 + $0x1], 1 }
  0x1e   :  { %126 = vsyncpa [#allocation4], 1 }
  0x1f   :  { %128 = vsyncpa [#allocation4 + $0x1], 1 }

// kernel: custom-call.8
= control target key start
LH: loop header
LB: loop body
LE: loop exit
PB: predicated region body
PF: predicated region fallthrough
CT: control target
= control target key end

     0   :  { %s6_s0 = inlined_call_operand.vmem [shape: f32[2,32], index: 0, kind: output, shape index: {}]  }

// kernel: pointnet_set_abstraction.1
= control target key start
LH: loop header
LB: loop body
LE: loop exit
PB: predicated region body
PF: predicated region fallthrough
CT: control target
= control target key end

     0   :  { %s923_s18 = smov 0   ;;  %s925_s19 = smov 0   ;;  %s1020_s0 = inlined_call_operand.vmem [shape: bf16[16,16,8], index: 0, kind: input, shape index: {}]   ;;  %s1021_s1 = inlined_call_operand.vmem [shape: bf16[8,128], index: 1, kind: input, shape index: {}]   ;;  %s1022_s2 = inlined_call_operand.vmem [shape: bf16[128,128], index: 2, kind: input, shape index: {}]   ;;  %s1023_s3 = inlined_call_operand.vmem [shape: f32[1,128], index: 3, kind: input, shape index: {}]   ;;  %s1024_s4 = inlined_call_operand.vmem [shape: f32[1,128], index: 4, kind: input, shape index: {}]   ;;  %s1025_s5 = inlined_call_operand.vmem [shape: f32[16,128], index: 5, kind: output, shape index: {}]  }
   0x1   :  { %s927_s20 = smov 0  }
   0x2 LB: > { %s27_s21 = sadd.s32 1, %s887_s19  ;;  %p738_p0 = scmp.ge.s32.totalorder %s891_s20, 1  ;;  %s891_s20 = sphi %s927_s20, %s15_s20   ;;  %s887_s19 = sphi %s925_s19, %s1027_s19   ;;  %s883_s18 = sphi %s923_s18, %s1026_s18  }
   0x3   : > { %p29_p1 = scmp.ge.s32.totalorder %s27_s21, 2  ;;  %p208_p2 = scmp.lt.s32.totalorder %s891_s20, 3 }
   0x5   : > { %s1029_s21 = smov (%p29_p1, %s27_s21), 0  ;;  %p209_p3 = pnand %p738_p0, %p208_p2 }
   0x6   : > { %s739_s24 = sshll.u32 (!%p209_p3), %s883_s18, 3  ;;  %p252_p5 = scmp.lt.s32.totalorder (!%p209_p3), %s883_s18, 1 }
   0x7   : > { %212 = sbr.rel (%p209_p3) target bundleno = 429 (0x1ad), region = 40  ;;  %p242_p4 = scmp.lt.s32.totalorder (!%p209_p3), %s739_s24, 15 }
   0xc   : > { %v273_v0 = vld [vmem:[%s1021_s1] sm:$0xf]  ;;  %vm343_vm0 = vcmask 1043456   ;;  %s1031_s24 = smov (!%p242_p4, %s739_s24), 15  ;;  %vm318_vm1 = vcmask 64512   ;;  %v833_v6 = vld [vmem:[%s1022_s2 + $0x38] sm:$0xff] }
   0xd   : > { %v345_v1 = vsel %vm343_vm0, %v273_v0, 0  ;;  %s817_s25 = sshll.u32 %s1031_s24, 3  ;;  %488 = vmatpush.bf16.msra.mxu1 %v833_v6  ;;  %v832_v7 = vld [vmem:[%s1022_s2 + $0x30] sm:$0xff]  ;;  %835 = vmatpush.bf16.msra.mxu2 %v833_v6  ;;  %v831_v8 = vld [vmem:[%s1022_s2 + $0x28] sm:$0xff]  ;;  %v830_v10 = vld [vmem:[%s1022_s2 + $0x20] sm:$0xff]  ;;  %vm621_vm2 = vcmask 1041409  }
   0xe   : > { %354 = vmatpush.bf16.msra.mxu0 %v345_v1  ;;  %834 = vmatpush.bf16.msra.mxu3 %v345_v1  ;;  %s249_s28 = scalar_lea.vmem %s1020_s0, %s817_s25  ;;  %v829_v14 = vld [vmem:[%s1022_s2 + $0x18] sm:$0xff]  ;;  %v828_v15 = vld [vmem:[%s1022_s2 + $0x10] sm:$0xff]  ;;  %v827_v16 = vld [vmem:[%s1022_s2 + $0x8] sm:$0xff]  ;;  %s1033_s18 = smov (!%p252_p5, %s883_s18), 1  ;;  %vm623_vm3 = vcmask 1042434   ;;  %vm625_vm4 = vcmask 1043459  }
   0xf   : > { %v818_v2 = vld [vmem:[%s249_s28] sm:$0xff]  ;;  %v819_v3 = vld [vmem:[%s249_s28 + $0x8] sm:$0xff]  ;;  %v820_v4 = vld [vmem:[%s249_s28 + $0x10] sm:$0xff]  ;;  %vm627_vm5 = vcmask 1044484   ;;  %vm629_vm6 = vcmask 1045509   ;;  %vm631_vm7 = vcmask 1046534  }
  0x10   : > { %v823_v5 = vld [vmem:[%s249_s28 + $0x28] sm:$0xff]  ;;  %v821_v9 = vld [vmem:[%s249_s28 + $0x18] sm:$0xff]  ;;  %v824_v11 = vld [vmem:[%s249_s28 + $0x30] sm:$0xff]  ;;  %vm633_vm8 = vcmask 1047559  }
  0x11   : > { %775 = vmatmul.msk.bf16.vlgmr.msra.gmra.mxu0 %vm318_vm1, %v818_v2  ;;  %780 = vmatmul.msk.bf16.vlgmr.msra.gmra.mxu3 %vm318_vm1, %v823_v5  ;;  %v822_v12 = vld [vmem:[%s249_s28 + $0x20] sm:$0xff]  ;;  %v825_v13 = vld [vmem:[%s249_s28 + $0x38] sm:$0xff]  ;;  %s742_s28 = sshll.u32 %s1033_s18, 3 }
  0x12   : > { %489 = vmatpush.bf16.msra.mxu1 %v832_v7  ;;  %836 = vmatpush.bf16.msra.mxu2 %v832_v7  ;;  %v826_v17 = vld [vmem:[%s1022_s2] sm:$0xff]  ;;  %s255_s6 = scalar_lea.vmem %s1025_s5, %s742_s28 }
  0x13   : > { %v867_v19 = vld [vmem:[%s1023_s3] ss:$0 sm:$0xff] }
  0x16   : > { %490 = vmatpush.bf16.msra.mxu1 %v831_v8  ;;  %837 = vmatpush.bf16.msra.mxu2 %v831_v8 }
  0x1a   : > { %491 = vmatpush.bf16.msra.mxu1 %v830_v10  ;;  %838 = vmatpush.bf16.msra.mxu2 %v830_v10 }
  0x1e   : > { %492 = vmatpush.bf16.msra.mxu1 %v829_v14  ;;  %839 = vmatpush.bf16.msra.mxu2 %v829_v14 }
  0x21   : > { %776 = vmatmul.msk.bf16.gmra.mxu0 %vm318_vm1, %v819_v3  ;;  %781 = vmatmul.msk.bf16.gmra.mxu3 %vm318_vm1, %v824_v11 }
  0x22   : > { %493 = vmatpush.bf16.msra.mxu1 %v828_v15  ;;  %840 = vmatpush.bf16.msra.mxu2 %v828_v15 }
  0x26   : > { %494 = vmatpush.bf16.msra.mxu1 %v827_v16  ;;  %841 = vmatpush.bf16.msra.mxu2 %v827_v16 }
  0x2a   : > { %495 = vmatpush.bf16.msra.mxu1 %v826_v17  ;;  %842 = vmatpush.bf16.msra.mxu2 %v826_v17 }
  0x31   : > { %777 = vmatmul.msk.bf16.gmra.mxu0 %vm318_vm1, %v820_v4  ;;  %782 = vmatmul.msk.bf16.gmra.mxu3 %vm318_vm1, %v825_v13 }
  0x41   : > { %778 = vmatmul.msk.bf16.gmra.mxu0 %vm318_vm1, %v821_v9 }
  0x51   : > { %779 = vmatmul.msk.bf16.gmra.mxu0 %vm318_vm1, %v822_v12 }
  0x8e   : > { %v356_v18 = vpop.f32.mrf.mxu0 }
  0x8f   : > { %v357_v20 = vadd.f32 %v867_v19, %v356_v18 }
  0x91   : > { %v396_v23 = vmax.f32 %v357_v20, 0.0 }
  0x94   : > { %v381_v48 = vpop.f32.mrf.mxu3 }
  0x95   : > { %v382_v57 = vadd.f32 %v867_v19, %v381_v48 }
  0x96   : > { %v358_v21 = vpop.f32.mrf.mxu0 }
  0x97   : > { %v359_v22 = vadd.f32 %v867_v19, %v358_v21  ;;  %v406_v59 = vmax.f32 %v382_v57, 0.0 }
  0x99   : > { %v397_v24 = vmax.f32 %v359_v22, 0.0 }
  0x9b   : > { %v412_v25 = vpack.c.bf16 %v397_v24, %v396_v23  ;;  %v988_v23 = vld [vmem:[%s1024_s4] ss:$0 sm:$0xff] }
  0x9c   : > { %v383_v52 = vpop.f32.mrf.mxu3 }
  0x9d   : > { %496 = vmatmul.bf16.vlgmr.msra.gmra.mxu1 %v412_v25  ;;  %v384_v58 = vadd.f32 %v867_v19, %v383_v52 }
  0x9e   : > { %v361_v26 = vpop.f32.mrf.mxu0 }
  0x9f   : > { %v362_v27 = vadd.f32 %v867_v19, %v361_v26  ;;  %v407_v60 = vmax.f32 %v384_v58, 0.0 }
  0xa1   : > { %v398_v30 = vmax.f32 %v362_v27, 0.0  ;;  %v417_v61 = vpack.c.bf16 %v407_v60, %v406_v59 }
  0xa4   : > { %v386_v56 = vpop.f32.mrf.mxu3 }
  0xa5   : > { %v387_v63 = vadd.f32 %v867_v19, %v386_v56 }
  0xa6   : > { %v363_v28 = vpop.f32.mrf.mxu0 }
  0xa7   : > { %v364_v29 = vadd.f32 %v867_v19, %v363_v28  ;;  %v408_v2 = vmax.f32 %v387_v63, 0.0 }
  0xa9   : > { %v399_v31 = vmax.f32 %v364_v29, 0.0 }
  0xab   : > { %v413_v32 = vpack.c.bf16 %v399_v31, %v398_v30 }
  0xac   : > { %v388_v62 = vpop.f32.mrf.mxu3 }
  0xad   : > { %501 = vmatmul.bf16.gmra.mxu1 %v413_v32  ;;  %v389_v0 = vadd.f32 %v867_v19, %v388_v62 }
  0xae   : > { %v366_v33 = vpop.f32.mrf.mxu0 }
  0xaf   : > { %v367_v34 = vadd.f32 %v867_v19, %v366_v33  ;;  %v409_v3 = vmax.f32 %v389_v0, 0.0 }
  0xb1   : > { %v400_v37 = vmax.f32 %v367_v34, 0.0  ;;  %v418_v4 = vpack.c.bf16 %v409_v3, %v408_v2 }
  0xb4   : > { %v391_v1 = vpop.f32.mrf.mxu3 }
  0xb5   : > { %v392_v6 = vadd.f32 %v867_v19, %v391_v1 }
  0xb6   : > { %v368_v35 = vpop.f32.mrf.mxu0 }
  0xb7   : > { %v369_v36 = vadd.f32 %v867_v19, %v368_v35  ;;  %v410_v8 = vmax.f32 %v392_v6, 0.0 }
  0xb9   : > { %v401_v38 = vmax.f32 %v369_v36, 0.0 }
  0xbb   : > { %v414_v39 = vpack.c.bf16 %v401_v38, %v400_v37 }
  0xbc   : > { %v393_v5 = vpop.f32.mrf.mxu3 }
  0xbd   : > { %506 = vmatmul.bf16.gmra.mxu1 %v414_v39  ;;  %v394_v7 = vadd.f32 %v867_v19, %v393_v5 }
  0xbe   : > { %v371_v40 = vpop.f32.mrf.mxu0 }
  0xbf   : > { %v372_v41 = vadd.f32 %v867_v19, %v371_v40  ;;  %v411_v9 = vmax.f32 %v394_v7, 0.0 }
  0xc1   : > { %v402_v44 = vmax.f32 %v372_v41, 0.0  ;;  %v419_v10 = vpack.c.bf16 %v411_v9, %v410_v8 }
  0xc6   : > { %v373_v42 = vpop.f32.mrf.mxu0 }
  0xc7   : > { %v374_v43 = vadd.f32 %v867_v19, %v373_v42 }
  0xc9   : > { %v403_v45 = vmax.f32 %v374_v43, 0.0 }
  0xcb   : > { %v415_v46 = vpack.c.bf16 %v403_v45, %v402_v44 }
  0xcd   : > { %511 = vmatmul.bf16.gmra.mxu1 %v415_v46 }
  0xce   : > { %v376_v47 = vpop.f32.mrf.mxu0 }
  0xcf   : > { %v377_v49 = vadd.f32 %v867_v19, %v376_v47 }
  0xd1   : > { %v404_v53 = vmax.f32 %v377_v49, 0.0 }
  0xd6   : > { %v378_v50 = vpop.f32.mrf.mxu0 }
  0xd7   : > { %v379_v51 = vadd.f32 %v867_v19, %v378_v50 }
  0xd9   : > { %v405_v54 = vmax.f32 %v379_v51, 0.0 }
  0xdb   : > { %v416_v55 = vpack.c.bf16 %v405_v54, %v404_v53 }
  0xdd   : > { %516 = vmatmul.bf16.vlgmr.msra.gmra.mxu2 %v416_v55 }
  0xed   : > { %521 = vmatmul.bf16.gmra.mxu2 %v417_v61 }
  0xfd   : > { %526 = vmatmul.bf16.gmra.mxu2 %v418_v4 }
 0x10d   : > { %531 = vmatmul.bf16.gmra.mxu2 %v419_v10 }
 0x11a   : > { %v497_v11 = vpop.f32.mrf.mxu1 }
 0x11b   : > { %v498_v30 = vadd.f32 %v988_v23, %v497_v11 }
 0x11d   : > { %v537_v42 = vmax.f32 %v498_v30, 0.0 }
 0x122   : > { %v499_v12 = vpop.f32.mrf.mxu1 }
 0x123   : > { %v500_v27 = vadd.f32 %v988_v23, %v499_v12 }
 0x125   : > { %v538_v38 = vmax.f32 %v500_v27, 0.0 }
 0x127   : > { %v553_v53 = vmax.f32 %v537_v42, %v538_v38 }
 0x129   : > { %v554_v63 = vrot.slane %v553_v53, 4 }
 0x12a   : > { %v502_v13 = vpop.f32.mrf.mxu1 }
 0x12b   : > { %v503_v28 = vadd.f32 %v988_v23, %v502_v13  ;;  %v555_v7 = vmax.f32 %v553_v53, %v554_v63 }
 0x12d   : > { %v539_v39 = vmax.f32 %v503_v28, 0.0 }
 0x132   : > { %v504_v14 = vpop.f32.mrf.mxu1 }
 0x133   : > { %v505_v25 = vadd.f32 %v988_v23, %v504_v14  ;;  %v556_v14 = vrot.slane %v555_v7, 2 }
 0x135   : > { %v540_v33 = vmax.f32 %v505_v25, 0.0  ;;  %v557_v25 = vmax.f32 %v555_v7, %v556_v14 }
 0x137   : > { %v560_v47 = vmax.f32 %v539_v39, %v540_v33 }
 0x139   : > { %v561_v59 = vrot.slane %v560_v47, 4 }
 0x13a   : > { %v507_v16 = vpop.f32.mrf.mxu1 }
 0x13b   : > { %v508_v31 = vadd.f32 %v988_v23, %v507_v16  ;;  %v562_v3 = vmax.f32 %v560_v47, %v561_v59 }
 0x13d   : > { %v541_v43 = vmax.f32 %v508_v31, 0.0  ;;  %v563_v10 = vrot.slane %v562_v3, 2 }
 0x142   : > { %v509_v18 = vpop.f32.mrf.mxu1 }
 0x143   : > { %v510_v26 = vadd.f32 %v988_v23, %v509_v18 }
 0x145   : > { %v542_v36 = vmax.f32 %v510_v26, 0.0 }
 0x147   : > { %v567_v51 = vmax.f32 %v541_v43, %v542_v36 }
 0x149   : > { %v568_v61 = vrot.slane %v567_v51, 4 }
 0x14a   : > { %v512_v21 = vpop.f32.mrf.mxu1 }
 0x14b   : > { %v513_v34 = vadd.f32 %v988_v23, %v512_v21  ;;  %v569_v5 = vmax.f32 %v567_v51, %v568_v61 }
 0x14d   : > { %v543_v48 = vmax.f32 %v513_v34, 0.0  ;;  %v570_v12 = vrot.slane %v569_v5, 2 }
 0x152   : > { %v514_v19 = vpop.f32.mrf.mxu1 }
 0x153   : > { %v515_v29 = vadd.f32 %v988_v23, %v514_v19  ;;  %v571_v19 = vmax.f32 %v569_v5, %v570_v12 }
 0x155   : > { %v544_v40 = vmax.f32 %v515_v29, 0.0  ;;  %v572_v33 = vrot.slane %v571_v19, 1 }
 0x157   : > { %v574_v54 = vmax.f32 %v543_v48, %v544_v40 }
 0x159   : > { %v575_v0 = vrot.slane %v574_v54, 4 }
 0x15b   : > { %v576_v8 = vmax.f32 %v574_v54, %v575_v0 }
 0x160   : > { %v517_v15 = vpop.f32.mrf.mxu2 }
 0x161   : > { %v518_v37 = vadd.f32 %v988_v23, %v517_v15  ;;  %v577_v15 = vrot.slane %v576_v8, 2 }
 0x163   : > { %v545_v52 = vmax.f32 %v518_v37, 0.0  ;;  %v578_v26 = vmax.f32 %v576_v8, %v577_v15 }
 0x165   : > { %v579_v36 = vrot.slane %v578_v26, 1 }
 0x168   : > { %v519_v17 = vpop.f32.mrf.mxu2 }
 0x169   : > { %v520_v32 = vadd.f32 %v988_v23, %v519_v17 }
 0x16b   : > { %v546_v44 = vmax.f32 %v520_v32, 0.0 }
 0x16d   : > { %v581_v57 = vmax.f32 %v545_v52, %v546_v44  ;;  %v580_v44 = vmax.f32 %v578_v26, %v579_v36 }
 0x16f   : > { %v582_v1 = vrot.slane %v581_v57, 4 }
 0x170   : > { %v522_v20 = vpop.f32.mrf.mxu2 }
 0x171   : > { %v523_v41 = vadd.f32 %v988_v23, %v522_v20  ;;  %v583_v9 = vmax.f32 %v581_v57, %v582_v1  ;;  %v564_v20 = vmax.f32 %v562_v3, %v563_v10 }
 0x173   : > { %v547_v55 = vmax.f32 %v523_v41, 0.0  ;;  %v584_v17 = vrot.slane %v583_v9, 2  ;;  %v565_v30 = vrot.slane %v564_v20, 1  ;;  %v573_v41 = vmax.f32 %v571_v19, %v572_v33 }
 0x175   : > { %v585_v29 = vmax.f32 %v583_v9, %v584_v17  ;;  %v566_v39 = vmax.f32 %v564_v20, %v565_v30 }
 0x177   : > { %v586_v38 = vrot.slane %v585_v29, 1 }
 0x178   : > { %v524_v22 = vpop.f32.mrf.mxu2 }
 0x179   : > { %v525_v35 = vadd.f32 %v988_v23, %v524_v22 }
 0x17b   : > { %v548_v49 = vmax.f32 %v525_v35, 0.0  ;;  %v558_v35 = vrot.slane %v557_v25, 1 }
 0x17d   : > { %v588_v60 = vmax.f32 %v547_v55, %v548_v49  ;;  %v559_v43 = vmax.f32 %v557_v25, %v558_v35 }
 0x17f   : > { %v589_v4 = vrot.slane %v588_v60, 4  ;;  %v622_v47 = vsel %vm621_vm2, %v566_v39, %v559_v43 }
 0x180   : > { %v527_v24 = vpop.f32.mrf.mxu2 }
 0x181   : > { %v528_v45 = vadd.f32 %v988_v23, %v527_v24  ;;  %v590_v11 = vmax.f32 %v588_v60, %v589_v4 }
 0x183   : > { %v549_v58 = vmax.f32 %v528_v45, 0.0  ;;  %v591_v21 = vrot.slane %v590_v11, 2 }
 0x185   : > { %v592_v31 = vmax.f32 %v590_v11, %v591_v21 }
 0x188   : > { %v529_v46 = vpop.f32.mrf.mxu2 }
 0x189   : > { %v530_v50 = vadd.f32 %v988_v23, %v529_v46  ;;  %v587_v46 = vmax.f32 %v585_v29, %v586_v38 }
 0x18b   : > { %v550_v56 = vmax.f32 %v530_v50, 0.0  ;;  %v624_v50 = vsel %vm623_vm3, %v573_v41, %v622_v47 }
 0x18c   : > { %v626_v52 = vsel %vm625_vm4, %v580_v44, %v624_v50 }
 0x18d   : > { %v595_v62 = vmax.f32 %v549_v58, %v550_v56  ;;  %v628_v54 = vsel %vm627_vm5, %v587_v46, %v626_v52 }
 0x18f   : > { %v596_v6 = vrot.slane %v595_v62, 4 }
 0x190   : > { %v532_v2 = vpop.f32.mrf.mxu2 }
 0x191   : > { %v597_v13 = vmax.f32 %v595_v62, %v596_v6  ;;  %v533_v16 = vadd.f32 %v988_v23, %v532_v2 }
 0x193   : > { %v598_v24 = vrot.slane %v597_v13, 2  ;;  %v551_v27 = vmax.f32 %v533_v16, 0.0 }
 0x195   : > { %v599_v34 = vmax.f32 %v597_v13, %v598_v24 }
 0x197   : > { %v600_v42 = vrot.slane %v599_v34, 1 }
 0x198   : > { %v534_v18 = vpop.f32.mrf.mxu2 }
 0x199   : > { %v535_v22 = vadd.f32 %v988_v23, %v534_v18  ;;  %v593_v23 = vrot.slane %v592_v31, 1  ;;  %v601_v51 = vmax.f32 %v599_v34, %v600_v42 }
 0x19b   : > { %v552_v28 = vmax.f32 %v535_v22, 0.0  ;;  %v594_v48 = vmax.f32 %v592_v31, %v593_v23 }
 0x19d   : > { %v602_v32 = vmax.f32 %v551_v27, %v552_v28  ;;  %v630_v55 = vsel %vm629_vm6, %v594_v48, %v628_v54 }
 0x19e   : > { %v632_v57 = vsel %vm631_vm7, %v601_v51, %v630_v55 }
 0x19f   : > { %v603_v37 = vrot.slane %v602_v32, 4 }
 0x1a1   : > { %v604_v40 = vmax.f32 %v602_v32, %v603_v37 }
 0x1a3   : > { %v605_v45 = vrot.slane %v604_v40, 2 }
 0x1a5   : > { %v606_v49 = vmax.f32 %v604_v40, %v605_v45 }
 0x1a7   : > { %v607_v53 = vrot.slane %v606_v49, 1 }
 0x1a9   : > { %v608_v56 = vmax.f32 %v606_v49, %v607_v53 }
 0x1ab   : > { %v634_v58 = vsel %vm633_vm8, %v608_v56, %v632_v57 }
 0x1ac   : > { %636 = vst [vmem:[%s255_s6] sm:$0xff] %v634_v58 }
 0x1ad PF: > { %s15_s20 = sadd.s32 1, %s891_s20   ;;  %s1026_s18 = smov %s887_s19 }
 0x1ae   : > { %p12_p6 = scmp.ge.s32.totalorder %s15_s20, 4   ;;  %s1027_s19 = smov %s1029_s21 }
 0x1b0   :  { %14 = sbr.rel (!%p12_p6) target bundleno = 2 (0x2), region = 78 }

</bundles_post_ra>
